<compile_context>
chip_gen: v7x
topology: tpu7x:2x2x1
jax: 0.10.0
libtpu: 0.0.40
codegen_flags: <defaults>
</compile_context>

<pallas_src>
import functools
import math

import jax
import jax.numpy as jnp
from jax.experimental import pallas as pl
from jax.experimental.pallas import tpu as pltpu

LN_EPS = 1e-5  # nn.LayerNorm default eps


def _fused_encoder_kernel(x_ref, mask_ref, nf_ref, nl_ref, gamma_ref, beta_ref,
                          w_ref, b_ref, o_ref, state_ref, *,
                          true_c, skip_connect, rescale):
    """grid = (row_blocks, n_layers); one invocation = one layer on one block.

    Per layer: LayerNorm -> Conv1d(k=3, pad=1) as ONE matmul -> ReLU -> mask ->
    residual [-> skip-connect rescale].  The running activation stays resident
    in the `state_ref` VMEM scratch across the (sequential) layer axis.
    """
    layer = pl.program_id(1)
    n_layers = pl.num_programs(1)
    rows, cp = state_ref.shape

    # Layer 0: seed the resident activation from the (padded) input block.
    @pl.when(layer == 0)
    def _init():
        state_ref[...] = x_ref[...].astype(jnp.float32)

    x = state_ref[...]                                      # (rows, Cp) f32

    # ---- LayerNorm over the true channel count (f32 statistics) ----
    inv_c = 1.0 / true_c
    mu = jnp.sum(x, axis=-1, keepdims=True) * inv_c
    xc = x - mu
    if cp != true_c:
        # keep the zero-padded lanes out of the variance (and hence out of xn)
        lane = jax.lax.broadcasted_iota(jnp.int32, (1, cp), 1)
        xc = jnp.where(lane < true_c, xc, 0.0)
    var = jnp.sum(xc * xc, axis=-1, keepdims=True) * inv_c
    xn = xc * jax.lax.rsqrt(var + LN_EPS) * gamma_ref[0] + beta_ref[0]

    # ---- Conv1d(C, C, kernel=3, padding=1) as a single MXU contraction ----
    # im2col operand [x[t-1] | x[t] | x[t+1]] along lanes: (rows, 3*Cp).
    # nf/nl zero the rows whose t-1 / t+1 neighbour belongs to another batch
    # element (or is out of range), implementing the conv's zero padding.
    # TODO(synk): the sublane shift could use pltpu.roll (XLU slot) instead of
    # concatenate; kept as concatenate for lowering robustness.
    zrow = jnp.zeros((1, cp), xn.dtype)
    xm1 = jnp.concatenate([zrow, xn[:-1, :]], axis=0) * nf_ref[...]   # x[t-1]
    xp1 = jnp.concatenate([xn[1:, :], zrow], axis=0) * nl_ref[...]    # x[t+1]
    im2col = jnp.concatenate([xm1, xn, xp1], axis=-1)                 # (rows, 3Cp)
    y = jnp.dot(im2col.astype(w_ref.dtype), w_ref[0],
                preferred_element_type=jnp.float32) + b_ref[0]

    # ---- ReLU (Dropout(p=0.1) is identity in eval mode) ----
    # TODO(synk): training-mode dropout not implemented; eval semantics only.
    y = jnp.maximum(y, 0.0)

    # ---- sequence mask, broadcast (rows, 1) over channels ----
    y = y * mask_ref[...]

    # ---- residual (+ optional skip connection to the original input) ----
    out = x + y
    if skip_connect:
        out = rescale * (x_ref[...].astype(jnp.float32) + out)
    state_ref[...] = out

    # Only the final layer writes the output block back to HBM.
    @pl.when(layer == n_layers - 1)
    def _finalize():
        o_ref[...] = out.astype(o_ref.dtype)


def conv_encoder_forward(x, params, mask=None, skip_connect=False,
                         batch_block=None):
    """x: (B, T, C).  params: list of per-layer tuples
    (ln_gamma (1,C), ln_beta (1,C), conv_w (3,Cin,Cout), conv_b (1,C)),
    where conv_w[k] == torch_conv.weight[:, :, k].T ."""
    B, T, C = x.shape
    n_layers = len(params)
    rescale = 1.0 / math.sqrt(2)

    # --- lane-dense channel padding (multiple of 128) ---
    cp = ((C + 127) // 128) * 128
    pad_c = cp - C

    xp = jnp.pad(x, ((0, 0), (0, 0), (0, pad_c))) if pad_c else x
    x2 = xp.reshape(B * T, cp)

    # --- stack per-layer params so one fused kernel streams them by layer ---
    gam = jnp.stack([p[0] for p in params])                 # (L, 1, C)
    bet = jnp.stack([p[1] for p in params])                 # (L, 1, C)
    wgt = jnp.stack([p[2] for p in params])                 # (L, 3, C, C)
    bia = jnp.stack([p[3] for p in params])                 # (L, 1, C)
    if pad_c:
        gam = jnp.pad(gam, ((0, 0), (0, 0), (0, pad_c)))
        bet = jnp.pad(bet, ((0, 0), (0, 0), (0, pad_c)))
        bia = jnp.pad(bia, ((0, 0), (0, 0), (0, pad_c)))
        wgt = jnp.pad(wgt, ((0, 0), (0, 0), (0, pad_c), (0, pad_c)))
    wgt = wgt.reshape(n_layers, 3 * cp, cp)                 # (L, 3*Cp, Cp)

    # --- sequence mask as (rows, 1): C x less traffic than (B, T, C) ---
    if mask is None:
        m2 = jnp.ones((B * T, 1), jnp.float32)
    else:
        m2 = mask.astype(jnp.float32).reshape(B * T, 1)

    # --- conv zero-padding masks at sequence boundaries (t==0 / t==T-1) ---
    t_pos = jnp.arange(T, dtype=jnp.int32)
    not_first = jnp.tile((t_pos != 0).astype(jnp.float32), B).reshape(B * T, 1)
    not_last = jnp.tile((t_pos != T - 1).astype(jnp.float32), B).reshape(B * T, 1)

    # --- rows per block: fill the MXU / amortize per-step overhead while
    #     staying well inside scoped VMEM on all generations (v5e/v6e/v7x) ---
    if batch_block is None:
        batch_block = max(1, min(B, 512 // max(T, 1)))
    while B % batch_block:
        batch_block -= 1

    def _est_vmem_bytes(bb):  # state + double-buffered blocks + temporaries
        return 12 * bb * T * cp * 4 + 2 * (3 * cp * cp + 3 * cp) * 4
    while batch_block > 1 and _est_vmem_bytes(batch_block) > 20 * 1024 * 1024:
        batch_block -= 1
        while B % batch_block:
            batch_block -= 1
    rows = batch_block * T
    if rows % 8 and batch_block != B:       # (8,128) block-shape rule fallback
        batch_block, rows = B, B * T        # full-extent block is always legal

    grid = (B // batch_block, n_layers)
    kernel = functools.partial(_fused_encoder_kernel, true_c=C,
                               skip_connect=skip_connect, rescale=rescale)

    # Activation-sized blocks keep a constant block index along the layer axis,
    # so they are fetched once per row block and stay resident across layers.
    row_spec = pl.BlockSpec((rows, cp), lambda r, l: (r, 0))
    vec_spec = pl.BlockSpec((rows, 1), lambda r, l: (r, 0))
    par_spec = pl.BlockSpec((1, 1, cp), lambda r, l: (l, 0, 0))

    out2 = pl.pallas_call(
        kernel,
        out_shape=jax.ShapeDtypeStruct((B * T, cp), x.dtype),
        grid_spec=pltpu.PrefetchScalarGridSpec(
            num_scalar_prefetch=0,
            grid=grid,
            in_specs=[
                row_spec,                                            # x (== first_x)
                vec_spec,                                            # mask
                vec_spec,                                            # not_first
                vec_spec,                                            # not_last
                par_spec,                                            # LN gamma
                par_spec,                                            # LN beta
                pl.BlockSpec((1, 3 * cp, cp), lambda r, l: (l, 0, 0)),  # conv W
                par_spec,                                            # conv bias
            ],
            out_specs=row_spec,
            scratch_shapes=[pltpu.VMEM((rows, cp), jnp.float32)],
        ),
        compiler_params=pltpu.CompilerParams(
            dimension_semantics=("parallel", "arbitrary")),
    )(x2, m2, not_first, not_last, gam, bet, wgt, bia)

    out = out2.reshape(B, T, cp)
    return out[:, :, :C] if pad_c else out


def reference_forward(x, params, mask=None, skip_connect=False):
    """Pure-JAX reference with identical semantics (eval-mode PyTorch forward)."""
    rescale = 1.0 / math.sqrt(2)
    first_x = x
    for gamma, beta, w, b in params:
        prev = x
        mu = jnp.mean(x, axis=-1, keepdims=True)
        var = jnp.mean(jnp.square(x - mu), axis=-1, keepdims=True)
        xn = (x - mu) / jnp.sqrt(var + LN_EPS) * gamma[0] + beta[0]
        xpad = jnp.pad(xn, ((0, 0), (1, 1), (0, 0)))
        y = (jnp.einsum('btc,cd->btd', xpad[:, :-2], w[0])
             + jnp.einsum('btc,cd->btd', xpad[:, 1:-1], w[1])
             + jnp.einsum('btc,cd->btd', xpad[:, 2:], w[2]) + b[0])
        y = jnp.maximum(y, 0.0)
        if mask is not None:
            y = y * mask[:, :, None]
        x = prev + y
        if skip_connect:
            x = rescale * (first_x + x)
    return x


def init_params(key, size, n_layers):
    params = []
    fan_in = size * 3
    bound = 1.0 / math.sqrt(fan_in)
    for _ in range(n_layers):
        key, k1, k2, k3, k4 = jax.random.split(key, 5)
        gamma = 1.0 + 0.1 * jax.random.normal(k1, (1, size), jnp.float32)
        beta = 0.1 * jax.random.normal(k2, (1, size), jnp.float32)
        # (K, Cin, Cout) == permute of PyTorch Conv1d weight (Cout, Cin, K)
        w = jax.random.uniform(k3, (3, size, size), jnp.float32,
                               minval=-bound, maxval=bound)
        b = jax.random.uniform(k4, (1, size), jnp.float32,
                               minval=-bound, maxval=bound)
        params.append((gamma, beta, w, b))
    return params


if __name__ == "__main__":
    B, T, C = 2, 16, 32          # batch, seq, size
    n_layers = 3

    key = jax.random.PRNGKey(0)
    kx, km, kp = jax.random.split(key, 3)
    x = jax.random.normal(kx, (B, T, C), jnp.float32)
    mask = (jax.random.uniform(km, (B, T)) > 0.2).astype(jnp.float32)
    params = init_params(kp, C, n_layers)

    # f32 path, with mask
    out = jax.block_until_ready(
        conv_encoder_forward(x, params, mask=mask, skip_connect=False))
    ref = reference_forward(x, params, mask=mask, skip_connect=False)
    assert out.shape == (B, T, C)
    assert jnp.allclose(out, ref, atol=2e-4, rtol=2e-4), "mismatch vs reference"

    # skip_connect=True path
    out_sc = jax.block_until_ready(
        conv_encoder_forward(x, params, mask=mask, skip_connect=True))
    ref_sc = reference_forward(x, params, mask=mask, skip_connect=True)
    assert jnp.allclose(out_sc, ref_sc, atol=2e-4, rtol=2e-4)

    # no-mask path
    out_nm = jax.block_until_ready(conv_encoder_forward(x, params))
    ref_nm = reference_forward(x, params)
    assert jnp.allclose(out_nm, ref_nm, atol=2e-4, rtol=2e-4)

    # bf16 path (v6e/v7x feedback): bf16 activations/weights in HBM, bf16 MXU,
    # f32 LayerNorm / accumulation, bf16 store.  Loose smoke-test tolerance.
    xb = x.astype(jnp.bfloat16)
    params_b = [tuple(t.astype(jnp.bfloat16) for t in p) for p in params]
    out_b = jax.block_until_ready(
        conv_encoder_forward(xb, params_b, mask=mask, skip_connect=False))
    assert out_b.dtype == jnp.bfloat16 and out_b.shape == (B, T, C)
    assert jnp.allclose(out_b.astype(jnp.float32), ref, atol=1e-1, rtol=1e-1)

    print("KERNEL_OK")
</pallas_src>

<mosaic_0001>
module attributes {stable_mosaic.version = 11 : i64} {
  func.func @_fused_encoder_kernel(%arg0: i32, %arg1: i32, %arg2: memref<32x128xf32, #tpu.memory_space<vmem>>, %arg3: memref<32x1xf32, #tpu.memory_space<vmem>>, %arg4: memref<32x1xf32, #tpu.memory_space<vmem>>, %arg5: memref<32x1xf32, #tpu.memory_space<vmem>>, %arg6: memref<1x1x128xf32, #tpu.memory_space<vmem>>, %arg7: memref<1x1x128xf32, #tpu.memory_space<vmem>>, %arg8: memref<1x384x128xf32, #tpu.memory_space<vmem>>, %arg9: memref<1x1x128xf32, #tpu.memory_space<vmem>>, %arg10: memref<32x128xf32, #tpu.memory_space<vmem>>, %arg11: memref<32x128xf32, #tpu.memory_space<vmem>>) attributes {dimension_semantics = [#tpu.dimension_semantics<parallel>, #tpu.dimension_semantics<arbitrary>], iteration_bounds = array<i64: 1, 3>, scalar_prefetch = 0 : i64, scratch_operands = 1 : i64, tpu.core_type = #tpu.core_type<tc>, window_params = [{transform_indices = @transform_0, window_bounds = array<i64: 32, 128>}, {transform_indices = @transform_1, window_bounds = array<i64: 32, 1>}, {transform_indices = @transform_2, window_bounds = array<i64: 32, 1>}, {transform_indices = @transform_3, window_bounds = array<i64: 32, 1>}, {transform_indices = @transform_4, window_bounds = array<i64: 1, 1, 128>}, {transform_indices = @transform_5, window_bounds = array<i64: 1, 1, 128>}, {transform_indices = @transform_6, window_bounds = array<i64: 1, 384, 128>}, {transform_indices = @transform_7, window_bounds = array<i64: 1, 1, 128>}, {transform_indices = @transform_8, window_bounds = array<i64: 32, 128>}]} {
    %c0_i32 = arith.constant 0 : i32
    %0 = arith.cmpi eq, %arg1, %c0_i32 : i32
    %1 = arith.extui %0 : i1 to i32
    %c0_i32_0 = arith.constant 0 : i32
    %2 = arith.cmpi ne, %1, %c0_i32_0 : i32
    scf.if %2 {
      %c0_31 = arith.constant 0 : index
      %c0_32 = arith.constant 0 : index
      %64 = vector.load %arg2[%c0_31, %c0_32] : memref<32x128xf32, #tpu.memory_space<vmem>>, vector<32x128xf32>
      %c0_33 = arith.constant 0 : index
      %c0_34 = arith.constant 0 : index
      %65 = vector.load %arg11[%c0_33, %c0_34] : memref<32x128xf32, #tpu.memory_space<vmem>>, vector<32x128xf32>
      tpu.vector_store %arg11[%c0_33, %c0_34], %64 {strides = array<i32>} : memref<32x128xf32, #tpu.memory_space<vmem>>, vector<32x128xf32>,
    } else {
    }
    %c0 = arith.constant 0 : index
    %c0_1 = arith.constant 0 : index
    %3 = vector.load %arg11[%c0, %c0_1] : memref<32x128xf32, #tpu.memory_space<vmem>>, vector<32x128xf32>
    %cst = arith.constant dense<0.000000e+00> : vector<32xf32>
    %4 = vector.multi_reduction <add>, %3, %cst [1] : vector<32x128xf32> to vector<32xf32>
    %5 = vector.shape_cast %4 : vector<32xf32> to vector<32x1xf32>
    %cst_2 = arith.constant 3.125000e-02 : f32
    %6 = vector.broadcast %cst_2 : f32 to vector<32x1xf32>
    %7 = arith.mulf %5, %6 : vector<32x1xf32>
    %8 = vector.broadcast %7 : vector<32x1xf32> to vector<32x128xf32>
    %9 = arith.subf %3, %8 : vector<32x128xf32>
    %10 = tpu.iota {dimensions = array<i32: 1>} : vector<1x128xi32>
    %c32_i32 = arith.constant 32 : i32
    %11 = vector.broadcast %c32_i32 : i32 to vector<1x128xi32>
    %12 = arith.cmpi slt, %10, %11 : vector<1x128xi32>
    %cst_3 = arith.constant 0.000000e+00 : f32
    %13 = vector.shape_cast %12 : vector<1x128xi1> to vector<1x128xi1>
    %14 = vector.broadcast %13 : vector<1x128xi1> to vector<32x128xi1>
    %15 = vector.broadcast %cst_3 : f32 to vector<32x128xf32>
    %16 = arith.select %14, %9, %15 : vector<32x128xi1>, vector<32x128xf32>
    %17 = arith.mulf %16, %16 : vector<32x128xf32>
    %cst_4 = arith.constant dense<0.000000e+00> : vector<32xf32>
    %18 = vector.multi_reduction <add>, %17, %cst_4 [1] : vector<32x128xf32> to vector<32xf32>
    %19 = vector.shape_cast %18 : vector<32xf32> to vector<32x1xf32>
    %cst_5 = arith.constant 3.125000e-02 : f32
    %20 = vector.broadcast %cst_5 : f32 to vector<32x1xf32>
    %21 = arith.mulf %19, %20 : vector<32x1xf32>
    %cst_6 = arith.constant 9.99999974E-6 : f32
    %22 = vector.broadcast %cst_6 : f32 to vector<32x1xf32>
    %23 = arith.addf %21, %22 : vector<32x1xf32>
    %24 = math.rsqrt %23 : vector<32x1xf32>
    %25 = vector.broadcast %24 : vector<32x1xf32> to vector<32x128xf32>
    %26 = arith.mulf %16, %25 : vector<32x128xf32>
    %c0_7 = arith.constant 0 : index
    %c0_8 = arith.constant 0 : index
    %c0_9 = arith.constant 0 : index
    %27 = vector.load %arg6[%c0_7, %c0_8, %c0_9] : memref<1x1x128xf32, #tpu.memory_space<vmem>>, vector<1x1x128xf32>
    %28 = vector.shape_cast %27 : vector<1x1x128xf32> to vector<1x128xf32>
    %29 = vector.broadcast %28 : vector<1x128xf32> to vector<32x128xf32>
    %30 = arith.mulf %26, %29 : vector<32x128xf32>
    %c0_10 = arith.constant 0 : index
    %c0_11 = arith.constant 0 : index
    %c0_12 = arith.constant 0 : index
    %31 = vector.load %arg7[%c0_10, %c0_11, %c0_12] : memref<1x1x128xf32, #tpu.memory_space<vmem>>, vector<1x1x128xf32>
    %32 = vector.shape_cast %31 : vector<1x1x128xf32> to vector<1x128xf32>
    %33 = vector.broadcast %32 : vector<1x128xf32> to vector<32x128xf32>
    %34 = arith.addf %30, %33 : vector<32x128xf32>
    %cst_13 = arith.constant 0.000000e+00 : f32
    %35 = vector.broadcast %cst_13 : f32 to vector<1x128xf32>
    %36 = vector.extract_strided_slice %34 {offsets = [0, 0], sizes = [31, 128], strides = [1, 1]} : vector<32x128xf32> to vector<31x128xf32>
    %37 = tpu.concatenate %35, %36 in 0 : vector<1x128xf32>, vector<31x128xf32> -> vector<32x128xf32>
    %c0_14 = arith.constant 0 : index
    %c0_15 = arith.constant 0 : index
    %38 = vector.load %arg4[%c0_14, %c0_15] : memref<32x1xf32, #tpu.memory_space<vmem>>, vector<32x1xf32>
    %39 = vector.broadcast %38 : vector<32x1xf32> to vector<32x128xf32>
    %40 = arith.mulf %37, %39 : vector<32x128xf32>
    %41 = vector.extract_strided_slice %34 {offsets = [1, 0], sizes = [31, 128], strides = [1, 1]} : vector<32x128xf32> to vector<31x128xf32>
    %42 = tpu.concatenate %41, %35 in 0 : vector<31x128xf32>, vector<1x128xf32> -> vector<32x128xf32>
    %c0_16 = arith.constant 0 : index
    %c0_17 = arith.constant 0 : index
    %43 = vector.load %arg5[%c0_16, %c0_17] : memref<32x1xf32, #tpu.memory_space<vmem>>, vector<32x1xf32>
    %44 = vector.broadcast %43 : vector<32x1xf32> to vector<32x128xf32>
    %45 = arith.mulf %42, %44 : vector<32x128xf32>
    %46 = tpu.concatenate %40, %34, %45 in 1 : vector<32x128xf32>, vector<32x128xf32>, vector<32x128xf32> -> vector<32x384xf32>
    %c0_18 = arith.constant 0 : index
    %c0_19 = arith.constant 0 : index
    %c0_20 = arith.constant 0 : index
    %47 = vector.load %arg8[%c0_18, %c0_19, %c0_20] : memref<1x384x128xf32, #tpu.memory_space<vmem>>, vector<1x384x128xf32>
    %48 = vector.shape_cast %47 : vector<1x384x128xf32> to vector<384x128xf32>
    %cst_21 = arith.constant dense<0.000000e+00> : vector<32x128xf32>
    %49 = tpu.matmul %46, %48, %cst_21 {dimension_numbers = #tpu.dot_dimension_numbers<[1], [0], [0], [1], [0, 0, 1, 1], [], []>} : vector<32x384xf32>, vector<384x128xf32>, vector<32x128xf32> -> vector<32x128xf32>
    %c0_22 = arith.constant 0 : index
    %c0_23 = arith.constant 0 : index
    %c0_24 = arith.constant 0 : index
    %50 = vector.load %arg9[%c0_22, %c0_23, %c0_24] : memref<1x1x128xf32, #tpu.memory_space<vmem>>, vector<1x1x128xf32>
    %51 = vector.shape_cast %50 : vector<1x1x128xf32> to vector<1x128xf32>
    %52 = vector.broadcast %51 : vector<1x128xf32> to vector<32x128xf32>
    %53 = arith.addf %49, %52 : vector<32x128xf32>
    %cst_25 = arith.constant 0.000000e+00 : f32
    %54 = vector.broadcast %cst_25 : f32 to vector<32x128xf32>
    %55 = arith.maximumf %53, %54 : vector<32x128xf32>
    %c0_26 = arith.constant 0 : index
    %c0_27 = arith.constant 0 : index
    %56 = vector.load %arg3[%c0_26, %c0_27] : memref<32x1xf32, #tpu.memory_space<vmem>>, vector<32x1xf32>
    %57 = vector.broadcast %56 : vector<32x1xf32> to vector<32x128xf32>
    %58 = arith.mulf %55, %57 : vector<32x128xf32>
    %59 = arith.addf %3, %58 : vector<32x128xf32>
    %c0_28 = arith.constant 0 : index
    %c0_29 = arith.constant 0 : index
    %60 = vector.load %arg11[%c0_28, %c0_29] : memref<32x128xf32, #tpu.memory_space<vmem>>, vector<32x128xf32>
    tpu.vector_store %arg11[%c0_28, %c0_29], %59 {strides = array<i32>} : memref<32x128xf32, #tpu.memory_space<vmem>>, vector<32x128xf32>,
    %c2_i32 = arith.constant 2 : i32
    %61 = arith.cmpi eq, %arg1, %c2_i32 : i32
    %62 = arith.extui %61 : i1 to i32
    %c0_i32_30 = arith.constant 0 : i32
    %63 = arith.cmpi ne, %62, %c0_i32_30 : i32
    scf.if %63 {
      %c0_31 = arith.constant 0 : index
      %c0_32 = arith.constant 0 : index
      %64 = vector.load %arg10[%c0_31, %c0_32] : memref<32x128xf32, #tpu.memory_space<vmem>>, vector<32x128xf32>
      tpu.vector_store %arg10[%c0_31, %c0_32], %59 {strides = array<i32>} : memref<32x128xf32, #tpu.memory_space<vmem>>, vector<32x128xf32>,
    } else {
    }
    return
  }
  func.func @transform_0(%arg0: i32, %arg1: i32) -> (i32, i32) {
    %c0_i32 = arith.constant 0 : i32
    %c0_i32_0 = arith.constant 0 : i32
    return %arg0, %c0_i32 : i32, i32
  }
  func.func @transform_1(%arg0: i32, %arg1: i32) -> (i32, i32) {
    %c0_i32 = arith.constant 0 : i32
    %c0_i32_0 = arith.constant 0 : i32
    return %arg0, %c0_i32 : i32, i32
  }
  func.func @transform_2(%arg0: i32, %arg1: i32) -> (i32, i32) {
    %c0_i32 = arith.constant 0 : i32
    %c0_i32_0 = arith.constant 0 : i32
    return %arg0, %c0_i32 : i32, i32
  }
  func.func @transform_3(%arg0: i32, %arg1: i32) -> (i32, i32) {
    %c0_i32 = arith.constant 0 : i32
    %c0_i32_0 = arith.constant 0 : i32
    return %arg0, %c0_i32 : i32, i32
  }
  func.func @transform_4(%arg0: i32, %arg1: i32) -> (i32, i32, i32) {
    %c0_i32 = arith.constant 0 : i32
    %c0_i32_0 = arith.constant 0 : i32
    %c0_i32_1 = arith.constant 0 : i32
    return %arg1, %c0_i32, %c0_i32_0 : i32, i32, i32
  }
  func.func @transform_5(%arg0: i32, %arg1: i32) -> (i32, i32, i32) {
    %c0_i32 = arith.constant 0 : i32
    %c0_i32_0 = arith.constant 0 : i32
    %c0_i32_1 = arith.constant 0 : i32
    return %arg1, %c0_i32, %c0_i32_0 : i32, i32, i32
  }
  func.func @transform_6(%arg0: i32, %arg1: i32) -> (i32, i32, i32) {
    %c0_i32 = arith.constant 0 : i32
    %c0_i32_0 = arith.constant 0 : i32
    %c0_i32_1 = arith.constant 0 : i32
    return %arg1, %c0_i32, %c0_i32_0 : i32, i32, i32
  }
  func.func @transform_7(%arg0: i32, %arg1: i32) -> (i32, i32, i32) {
    %c0_i32 = arith.constant 0 : i32
    %c0_i32_0 = arith.constant 0 : i32
    %c0_i32_1 = arith.constant 0 : i32
    return %arg1, %c0_i32, %c0_i32_0 : i32, i32, i32
  }
  func.func @transform_8(%arg0: i32, %arg1: i32) -> (i32, i32) {
    %c0_i32 = arith.constant 0 : i32
    %c0_i32_0 = arith.constant 0 : i32
    return %arg0, %c0_i32 : i32, i32
  }
}

</mosaic_0001>

<bundles_post_ra>
// kernel: tpu_custom_call.1
= control target key start
LH: loop header
LB: loop body
LE: loop exit
PB: predicated region body
PF: predicated region fallthrough
CT: control target
= control target key end

     0   :  { %13 = vsyncpa [#allocation4], 0  ;;  %s1831_s0 = inlined_call_operand.vmem [shape: f32[32,128], index: 0, kind: input, shape index: {}]   ;;  %s1832_s1 = inlined_call_operand.vmem [shape: f32[32,1], index: 1, kind: input, shape index: {}]   ;;  %s1833_s2 = inlined_call_operand.vmem [shape: f32[32,1], index: 2, kind: input, shape index: {}]   ;;  %s1834_s3 = inlined_call_operand.vmem [shape: f32[32,1], index: 3, kind: input, shape index: {}]   ;;  %s1835_s4 = inlined_call_operand.vmem [shape: f32[3,1,128], index: 4, kind: input, shape index: {}]   ;;  %s1836_s5 = inlined_call_operand.vmem [shape: f32[3,1,128], index: 5, kind: input, shape index: {}]   ;;  %s1837_s6 = inlined_call_operand.hbm [shape: f32[3,384,128], index: 6, kind: input, shape index: {}]   ;;  %s1838_s7 = inlined_call_operand.vmem [shape: f32[3,1,128], index: 7, kind: input, shape index: {}]   ;;  %s1839_s8 = inlined_call_operand.hbm [shape: f32[32,128], index: 8, kind: output, shape index: {}]  }
   0x1   :  { %15 = vsyncpa [#allocation4 + $0x1], 0 }
   0x2   :  { %16 = vsyncpa [#allocation5], 0  ;;  %s1498_s27 = smov 0   ;;  %s1500_s28 = smov 0  }
   0x3   :  { %s1502_s29 = smov 0   ;;  %s1504_s30 = smov 0  }
   0x4   :  { %s1506_s9 = smov 0   ;;  %s1508_s10 = smov 0  }
   0x5 LB: > { %s1840_s11 = sadd.s32 4294967295, %s1444_s10   ;;  %s31_s12 = sadd.s32 1, %s1440_s9  ;;  %s1444_s10 = sphi %s1508_s10, %s22_s10   ;;  %s1440_s9 = sphi %s1506_s9, %s1849_s9   ;;  %s1436_s30 = sphi %s1504_s30, %s1848_s30   ;;  %s1432_s29 = sphi %s1502_s29, %s1847_s29   ;;  %s1428_s28 = sphi %s1500_s28, %s1846_s28   ;;  %s1424_s27 = sphi %s1498_s27, %s1845_s27  }
   0x6   : > { %p32_p0 = scmp.ge.s32.totalorder %s31_s12, 3  ;;  %s197_s13 = sadd.s32 1, %s1432_s29 }
   0x7   : > { %p204_p1 = scmp.ne.s32.totalorder %s1432_s29, %s1428_s28  ;;  %p205_p2 = scmp.eq.s32.totalorder %s1444_s10, 0 }
   0x8   : > { %s1851_s12 = smov (%p32_p0, %s31_s12), 0  ;;  %p210_p4 = scmp.ne.s32.totalorder %s1428_s28, %s1424_s27 }
   0x9   : > { %p206_p3 = por %p205_p2, %p204_p1  ;;  %s194_s14 = ssub.s32 %s1440_s9, %s1851_s12 }
   0xa   : > { %p211_p5 = scmp.eq.s32.totalorder %s1840_s11, 0  ;;  %p195_p6 = scmp.eq.s32.totalorder %s194_s14, 0 }
   0xb   : > { %p1267_p8 = scmp.lt.s32.totalorder %s1444_s10, 3  ;;  %s334_s17 = sand.u32 1, %s1432_s29  }
   0xc   : > { %p1539_p7 = por %p211_p5, %p210_p4  ;;  %s1255_s18 = smul.u32 6144, %s1440_s9 }
   0xd   : > { %s1545_s16 = scalar_select %p195_p6, %s1432_s29, %s197_s13  }
   0xe   : > { %s1254_s19 = smul.u32 384, %s334_s17  ;;  %s1552_s22 = scalar_lea.hbm %s1837_s6, %s1255_s18 }
   0xf   : > { %p1554_p9 = pnand %p1267_p8, %p206_p3  ;;  %s1560_s26 = scalar_lea.sflag [#allocation4], %s334_s17 }
  0x10   : > { %s338_s24 = scalar_lea.vmem [#allocation3], %s1254_s19  ;;  %s1334_s27 = scalar_lea.hbm %s1552_s22, 6144 }
  0x11   : > { %s345_s25 = sshll.u32 %s338_s24, 4  ;;  %p1335_p10 = scmp.ne.s32.totalorder %s1552_s22, %s1334_s27  ;;  %s1558_s25 = int_to_ptr.vmem [resolvable:$true] %s345_s25 }
  0x12   : > { %p1336_p11 = pneg %p1554_p9  ;;  %s1339_s18 = scalar_lea.hbm %s1837_s6, 18432 }
  0x13   : > { %p1340_p0 = scmp.lt.u32.totalorder %s1552_s22, %s1837_s6  ;;  %p1341_p1 = scmp.lt.u32.totalorder %s1339_s18, %s1334_s27 }
  0x14   : > { %p1337_p12 = pnand %p1336_p11, %p1335_p10  ;;  %p1343_p3 = scmp.lt.u32.totalorder %s1334_s27, %s1552_s22 }
  0x15   : > { %p1342_p2 = por %p1341_p1, %p1340_p0 }
  0x16   : > { %p1338_p13 = pneg %p1337_p12 }
  0x17   : > { %p1344_p4 = por %p1343_p3, %p1342_p2 }
  0x19   : > { %p1345_p5 = pnand %p1344_p4, %p1338_p13 }
  0x1b   : > { %1348 = shalt.err (!%p1345_p5)
}
  0x1c   : > { %s1349_s17 = scalar_lea.vmem %s1558_s25, 6144  ;;  %s1446_s19 = smov [#allocation3]  }
  0x1d   : > { %p1350_p6 = scmp.ne.s32.totalorder %s1558_s25, %s1349_s17  ;;  %s1354_s24 = sshll.u32 %s1446_s19, 4  ;;  %s1355_s24 = int_to_ptr.vmem [resolvable:$false] %s1354_s24 }
  0x1e   : > { %s1356_s13 = scalar_lea.vmem %s1355_s24, 12288  ;;  %p1357_p12 = scmp.lt.s32.totalorder %s1558_s25, %s1355_s24 }
  0x1f   : > { %p1352_p8 = pnand %p1350_p6, %p1336_p11  ;;  %p1358_p0 = scmp.lt.s32.totalorder %s1356_s13, %s1349_s17 }
  0x21   : > { %p1353_p10 = pneg %p1352_p8  ;;  %p1359_p1 = por %p1358_p0, %p1357_p12 }
  0x23   : > { %p1360_p2 = pnand %p1359_p1, %p1353_p10 }
  0x25   : > { %1363 = shalt.err (!%p1360_p2)
}
  0x26   : > { %s1447_s27 = smov 128   ;;  %s1448_s14 = smov 8  }
  0x27   : > { %1266 = dma.hbm_to_vmem [thread:$0]  (!%p1554_p9), %s1552_s22, 6144, %s1558_s25, %s1560_s26, %s1447_s27, %s1447_s27, %s1448_s14  }
  0x28   : > { %p1078_p11 = scmp.ge.s32.totalorder %s1444_s10, 1  ;;  %p359_p13 = scmp.lt.s32.totalorder %s1444_s10, 4 }
  0x2a   : > { %p360_p3 = pnand %p1078_p11, %p359_p13 }
  0x2b   : > { %s365_s18 = sand.u32 (!%p360_p3), 1, %s1428_s28  }
  0x2c   : > { %363 = sbr.rel (%p360_p3) target bundleno = 709 (0x2c5), region = 52  ;;  %s366_s21 = scalar_lea.sflag (!%p360_p3), [#allocation4], %s365_s18 }
  0x2d   : > { %s1256_s20 = smul.u32 (!%p360_p3), 384, %s365_s18 }
  0x2f   : > { %s1591_s17 = scalar_lea.vmem (!%p360_p3), [#allocation3], %s1256_s20 }
  0x33   : > { %1415 = dma.done.wait (%p1539_p7), %s366_s21, 6144  }
  0x34   : > { %1417 = vsyncadd (%p1539_p7), %s366_s21, 4294961152  ;;  %p450_p4 = scmp.lt.s32.totalorder %s1436_s30, 2  ;;  %p1079_p7 = scmp.ne.s32.totalorder %s1436_s30, 0 }
  0x35   : > { %v464_v0 = vld [vmem:[%s1831_s0] sm:$0xff] (!%p1079_p7)  ;;  %v465_v1 = vld [vmem:[%s1831_s0 + $0x8] sm:$0xff] (!%p1079_p7)  ;;  %v466_v2 = vld [vmem:[%s1831_s0 + $0x10] sm:$0xff] (!%p1079_p7) }
  0x36   : > { %s1599_s22 = scalar_select %p450_p4, %s1436_s30, 2 }
  0x37   : > { %463 = sbr.rel (%p1079_p7) target bundleno = 62 (0x3e), region = 60  ;;  %468 = vst [vmem:[#allocation2] sm:$0xff] (!%p1079_p7), %v464_v0  ;;  %469 = vst [vmem:[#allocation2 + $0x8] sm:$0xff] (!%p1079_p7), %v465_v1  ;;  %v467_v3 = vld [vmem:[%s1831_s0 + $0x18] sm:$0xff] (!%p1079_p7) }
  0x38   : > { %s452_s26 = scalar_lea.vmem %s1835_s4, %s1599_s22  ;;  %s455_s13 = scalar_lea.vmem %s1836_s5, %s1599_s22  ;;  %470 = vst [vmem:[#allocation2 + $0x10] sm:$0xff] (!%p1079_p7), %v466_v2  ;;  %471 = vst [vmem:[#allocation2 + $0x18] sm:$0xff] (!%p1079_p7), %v467_v3 }
  0x39   : > { %s458_s15 = scalar_lea.vmem %s1838_s7, %s1599_s22 }
  0x3e PF: > { %v1626_v4 = vld [vmem:[#allocation2] sm:$0xff]  ;;  %v1632_v6 = vld [vmem:[#allocation2 + $0x8] sm:$0xff]  ;;  %v1449_v8 = vmov 0   ;;  %v655_v14 = vld [vmem:[%s1591_s17 + $0x90] sm:$0xff]  ;;  %v492_v24 = vlaneseq  ;;  %vm555_vm1 = vcmask 1040384   ;;  %vm596_vm2 = vcmask 1046528  }
  0x3f   : > { %v1628_v5 = vld [vmem:[#allocation2 + $0x10] sm:$0xff]  ;;  %476 = vadd.xlane.f32.xlu0 %v1626_v4  ;;  %v1634_v7 = vld [vmem:[#allocation2 + $0x18] sm:$0xff]  ;;  %1325 = vset.pattern.permute.xlu1 %v1449_v8  ;;  %v653_v9 = vld [vmem:[%s1591_s17 + $0x80] sm:$0xff]  ;;  %p1083_p9 = scmp.ne.s32.totalorder %s1436_s30, 2 }
  0x40   : > { %480 = vadd.xlane.f32.xlu1 %v1628_v5  ;;  %1324 = vset.pattern.permute.xlu0 %v1449_v8  ;;  %v654_v10 = vld [vmem:[%s1591_s17 + $0x88] sm:$0xff]  ;;  %v637_v12 = vld [vmem:[%s1591_s17] sm:$0xff]  ;;  %v656_v16 = vld [vmem:[%s1591_s17 + $0x98] sm:$0xff]  ;;  %v1648_v25 = vand.u32 127, %v492_v24 }
  0x41   : > { %v1190_v11 = vpack.c.bf16 %v654_v10, %v653_v9  ;;  %v638_v13 = vld [vmem:[%s1591_s17 + $0x8] sm:$0xff]  ;;  %v639_v17 = vld [vmem:[%s1591_s17 + $0x10] sm:$0xff]  ;;  %v640_v18 = vld [vmem:[%s1591_s17 + $0x18] sm:$0xff]  ;;  %v1194_v19 = vpack.c.bf16 %v656_v16, %v655_v14 }
  0x42   : > { %v1192_v15 = vpack.c.bf16 %v638_v13, %v637_v12  ;;  %v669_v20 = vld [vmem:[%s1591_s17 + $0x100] sm:$0xff]  ;;  %v670_v21 = vld [vmem:[%s1591_s17 + $0x108] sm:$0xff]  ;;  %v1196_v22 = vpack.c.bf16 %v640_v18, %v639_v17  ;;  %vm494_vm0 = vcmp.lt.s32.totalorder %v1648_v25, 32  ;;  %v671_v46 = vld [vmem:[%s1591_s17 + $0x110] sm:$0xff] }
  0x43   : > { %478 = vadd.xlane.f32.xlu0 %v1632_v6  ;;  %1191 = vmatprep.subr.bf16.mxu0 %v1190_v11  ;;  %v1222_v23 = vpack.c.bf16 %v670_v21, %v669_v20  ;;  %v657_v41 = vld [vmem:[%s1591_s17 + $0xa0] sm:$0xff]  ;;  %v658_v42 = vld [vmem:[%s1591_s17 + $0xa8] sm:$0xff]  ;;  %v672_v48 = vld [vmem:[%s1591_s17 + $0x118] sm:$0xff] }
  0x44   : > { %482 = vadd.xlane.f32.xlu1 %v1634_v7  ;;  %1193 = vmatpush3.bf16.msra.mxu0 %v1192_v15  ;;  %v1198_v43 = vpack.c.bf16 %v658_v42, %v657_v41  ;;  %v641_v44 = vld [vmem:[%s1591_s17 + $0x20] sm:$0xff]  ;;  %v642_v45 = vld [vmem:[%s1591_s17 + $0x28] sm:$0xff]  ;;  %v1226_v49 = vpack.c.bf16 %v672_v48, %v671_v46  ;;  %v659_v51 = vld [vmem:[%s1591_s17 + $0xb0] sm:$0xff] }
  0x45   : > { %1195 = vmatprep.subr.bf16.mxu0 %v1194_v19  ;;  %1223 = vmatprep.subr.bf16.mxu1 %v1222_v23  ;;  %v1200_v47 = vpack.c.bf16 %v642_v45, %v641_v44  ;;  %v569_v50 = vld [vmem:[%s1833_s2 + $0x8] sm:$0xff]  ;;  %v660_v52 = vld [vmem:[%s1591_s17 + $0xb8] sm:$0xff]  ;;  %v643_v54 = vld [vmem:[%s1591_s17 + $0x30] sm:$0xff] }
  0x46   : > { %1225 = vmatpush3.bf16.msra.mxu1 %v1222_v23  ;;  %v1202_v53 = vpack.c.bf16 %v660_v52, %v659_v51  ;;  %v644_v55 = vld [vmem:[%s1591_s17 + $0x38] sm:$0xff]  ;;  %v673_v56 = vld [vmem:[%s1591_s17 + $0x120] sm:$0xff]  ;;  %v674_v58 = vld [vmem:[%s1591_s17 + $0x128] sm:$0xff] }
  0x47   : > { %1227 = vmatprep.subr.bf16.mxu1 %v1226_v49  ;;  %v1204_v57 = vpack.c.bf16 %v644_v55, %v643_v54  ;;  %v570_v59 = vld [vmem:[%s1833_s2 + $0x10] sm:$0xff]  ;;  %v1230_v60 = vpack.c.bf16 %v674_v58, %v673_v56  ;;  %v568_v61 = vld [vmem:[%s1833_s2] sm:$0xff]  ;;  %v662_v63 = vld [vmem:[%s1591_s17 + $0xc8] sm:$0xff] }
  0x48   : > { %1197 = vmatpush3.bf16.msra.mxu0 %v1196_v22  ;;  %v661_v62 = vld [vmem:[%s1591_s17 + $0xc0] sm:$0xff]  ;;  %v646_v2 = vld [vmem:[%s1591_s17 + $0x48] sm:$0xff]  ;;  %v675_v3 = vld [vmem:[%s1591_s17 + $0x130] sm:$0xff] }
  0x49   : > { %1199 = vmatprep.subr.bf16.mxu0 %v1198_v43  ;;  %v1206_v0 = vpack.c.bf16 %v662_v63, %v661_v62  ;;  %v645_v1 = vld [vmem:[%s1591_s17 + $0x40] sm:$0xff]  ;;  %v676_v9 = vld [vmem:[%s1591_s17 + $0x138] sm:$0xff]  ;;  %v867_v12 = vld [vmem:[%s1832_s1 + $0x8] sm:$0xff] }
  0x4a   : > { %1229 = vmatpush3.bf16.msra.mxu1 %v1226_v49  ;;  %v1208_v8 = vpack.c.bf16 %v646_v2, %v645_v1  ;;  %v609_v10 = vld [vmem:[%s1834_s3] sm:$0xff]  ;;  %v1234_v11 = vpack.c.bf16 %v676_v9, %v675_v3  ;;  %v663_v13 = vld [vmem:[%s1591_s17 + $0xd0] sm:$0xff]  ;;  %v664_v14 = vld [vmem:[%s1591_s17 + $0xd8] sm:$0xff] }
  0x4b   : > { %1231 = vmatprep.subr.bf16.mxu1 %v1230_v60  ;;  %v1210_v15 = vpack.c.bf16 %v664_v14, %v663_v13  ;;  %v647_v16 = vld [vmem:[%s1591_s17 + $0x50] sm:$0xff]  ;;  %v648_v17 = vld [vmem:[%s1591_s17 + $0x58] sm:$0xff]  ;;  %v677_v18 = vld [vmem:[%s1591_s17 + $0x140] sm:$0xff] }
  0x4c   : > { %1201 = vmatpush3.bf16.msra.mxu0 %v1200_v47  ;;  %v1212_v19 = vpack.c.bf16 %v648_v17, %v647_v16  ;;  %v678_v20 = vld [vmem:[%s1591_s17 + $0x148] sm:$0xff]  ;;  %v571_v22 = vld [vmem:[%s1833_s2 + $0x18] sm:$0xff]  ;;  %v665_v23 = vld [vmem:[%s1591_s17 + $0xe0] sm:$0xff] }
  0x4d   : > { %1203 = vmatprep.subr.bf16.mxu0 %v1202_v53  ;;  %v1238_v21 = vpack.c.bf16 %v678_v20, %v677_v18  ;;  %v666_v24 = vld [vmem:[%s1591_s17 + $0xe8] sm:$0xff]  ;;  %v651_v41 = vld [vmem:[%s1591_s17 + $0x70] sm:$0xff]  ;;  %v652_v42 = vld [vmem:[%s1591_s17 + $0x78] sm:$0xff] }
  0x4e   : > { %1233 = vmatpush3.bf16.msra.mxu1 %v1230_v60  ;;  %v681_v43 = vld [vmem:[%s1591_s17 + $0x160] sm:$0xff]  ;;  %v1220_v44 = vpack.c.bf16 %v652_v42, %v651_v41  ;;  %v682_v45 = vld [vmem:[%s1591_s17 + $0x168] sm:$0xff]  ;;  %v611_v47 = vld [vmem:[%s1834_s3 + $0x10] sm:$0xff] }
  0x4f   : > { %1235 = vmatprep.subr.bf16.mxu1 %v1234_v11  ;;  %v1246_v46 = vpack.c.bf16 %v682_v45, %v681_v43  ;;  %v683_v48 = vld [vmem:[%s1591_s17 + $0x170] sm:$0xff]  ;;  %v684_v49 = vld [vmem:[%s1591_s17 + $0x178] sm:$0xff] }
  0x50   : > { %1205 = vmatpush3.bf16.msra.mxu0 %v1204_v57  ;;  %v612_v56 = vld [vmem:[%s1834_s3 + $0x18] sm:$0xff]  ;;  %v866_v57 = vld [vmem:[%s1832_s1] sm:$0xff]  ;;  %v868_v25 = vld [vmem:[%s1832_s1 + $0x10] sm:$0xff] }
  0x51   : > { %1207 = vmatprep.subr.bf16.mxu0 %v1206_v0 }
  0x52   : > { %1237 = vmatpush3.bf16.msra.mxu1 %v1234_v11 }
  0x53   : > { %1239 = vmatprep.subr.bf16.mxu1 %v1238_v21 }
  0x54   : > { %1209 = vmatpush3.bf16.msra.mxu0 %v1208_v8 }
  0x55   : > { %1211 = vmatprep.subr.bf16.mxu0 %v1210_v15 }
  0x56   : > { %1241 = vmatpush3.bf16.msra.mxu1 %v1238_v21 }
  0x58   : > { %1213 = vmatpush3.bf16.msra.mxu0 %v1212_v19 }
  0xcc   : > { %v477_v26 = vpop.xlane.xlu0 %476 }
  0xcd   : > { %v481_v27 = vpop.xlane.xlu1 %480  ;;  %v484_v28 = vmul.f32 0.03125, %v477_v26  ;;  %v869_v26 = vld [vmem:[%s1832_s1 + $0x18] sm:$0xff] }
  0xce   : > { %v486_v29 = vmul.f32 0.03125, %v481_v27  ;;  %v1214_v27 = vpack.c.bf16 %v666_v24, %v665_v23 }
  0xcf   : > { %v488_v30 = vsub.f32 %v1626_v4, %v484_v28  ;;  %v649_v28 = vld [vmem:[%s1591_s17 + $0x60] sm:$0xff] }
  0xd0   : > { %v490_v31 = vsub.f32 %v1628_v5, %v486_v29  ;;  %v479_v32 = vpop.xlane.xlu0 %478  ;;  %v650_v29 = vld [vmem:[%s1591_s17 + $0x68] sm:$0xff]  ;;  %1215 = vmatprep.subr.bf16.mxu0 %v1214_v27 }
  0xd1   : > { %v485_v33 = vmul.f32 0.03125, %v479_v32  ;;  %v1655_v34 = vsel %vm494_vm0, %v488_v30, 0.0  ;;  %v1216_v30 = vpack.c.bf16 %v650_v29, %v649_v28  ;;  %v680_v32 = vld [vmem:[%s1591_s17 + $0x158] sm:$0xff]  ;;  %v483_v51 = vpop.xlane.xlu1 %482 }
  0xd2   : > { %v1659_v35 = vsel %vm494_vm0, %v490_v31, 0.0  ;;  %v501_v36 = vmul.f32 %v1655_v34, %v1655_v34  ;;  %v679_v31 = vld [vmem:[%s1591_s17 + $0x150] sm:$0xff]  ;;  %v487_v52 = vmul.f32 0.03125, %v483_v51 }
  0xd3   : > { %v489_v37 = vsub.f32 %v1632_v6, %v485_v33  ;;  %v503_v38 = vmul.f32 %v1659_v35, %v1659_v35  ;;  %v1242_v33 = vpack.c.bf16 %v680_v32, %v679_v31  ;;  %1217 = vmatpush3.bf16.msra.mxu0 %v1216_v30 }
  0xd4   : > { %505 = vadd.xlane.f32.xlu0 %v501_v36  ;;  %v610_v36 = vld [vmem:[%s1834_s3 + $0x8] sm:$0xff]  ;;  %v491_v53 = vsub.f32 %v1634_v7, %v487_v52 }
  0xd5   : > { %v1668_v39 = vsel %vm494_vm0, %v489_v37, 0.0  ;;  %v667_v37 = vld [vmem:[%s1591_s17 + $0xf0] sm:$0xff]  ;;  %1243 = vmatprep.subr.bf16.mxu1 %v1242_v33 }
  0xd6   : > { %v502_v40 = vmul.f32 %v1668_v39, %v1668_v39  ;;  %1245 = vmatpush3.bf16.msra.mxu1 %v1242_v33  ;;  %v1740_v54 = vsel %vm494_vm0, %v491_v53, 0.0 }
  0xd7   : > { %1247 = vmatprep.subr.bf16.mxu1 %v1246_v46  ;;  %v504_v55 = vmul.f32 %v1740_v54, %v1740_v54 }
  0xd8   : > { %509 = vadd.xlane.f32.xlu0 %v503_v38  ;;  %507 = vadd.xlane.f32.xlu1 %v502_v40  ;;  %v668_v38 = vld [vmem:[%s1591_s17 + $0xf8] sm:$0xff] }
  0xd9   : > { %v1218_v40 = vpack.c.bf16 %v668_v38, %v667_v37 }
  0xda   : > { %1249 = vmatpush3.bf16.msra.mxu1 %v1246_v46 }
  0xdb   : > { %1219 = vmatprep.subr.bf16.mxu0 %v1218_v40 }
  0xdc   : > { %1221 = vmatpush3.bf16.msra.mxu0 %v1220_v44 }
  0xe9   : > { %579 = vperm.xlu1 %1325, %v569_v50   ;;  %v1250_v50 = vpack.c.bf16 %v684_v49, %v683_v48 }
  0xeb   : > { %1251 = vmatprep.subr.bf16.mxu1 %v1250_v50 }
  0xec   : > { %1253 = vmatpush3.bf16.msra.mxu1 %v1250_v50 }
  0xed   : > { %584 = vperm.xlu1 %1325, %v570_v59  }
  0xee   : > { %574 = vperm.xlu0 %1324, %v568_v61  }
  0xf1   : > { %615 = vperm.xlu1 %1325, %v609_v10   ;;  %v1080_v10 = vld [vmem:[%s452_s26] ss:$0 sm:$0xff] }
  0xf2   : > { %877 = vperm.xlu0 %1324, %v867_v12   ;;  %v1081_v12 = vld [vmem:[%s455_s13] ss:$0 sm:$0xff] }
  0xf5   : > { %589 = vperm.xlu1 %1325, %v571_v22  }
  0xf6   : > { %887 = vperm.xlu0 %1324, %v869_v26  }
  0xf9   : > { %620 = vperm.xlu1 %1325, %v610_v36  }
  0xfd   : > { %625 = vperm.xlu1 %1325, %v611_v47  }
 0x121   : > { %511 = vadd.xlane.f32.xlu1 %v504_v55 }
 0x132   : > { %630 = vperm.xlu1 %1325, %v612_v56  }
 0x136   : > { %872 = vperm.xlu1 %1325, %v866_v57  }
 0x13a   : > { %882 = vperm.xlu1 %1325, %v868_v25  }
 0x161   : > { %v506_v58 = vpop.xlane.xlu0 %505 }
 0x162   : > { %v513_v59 = vmul.f32 0.03125, %v506_v58 }
 0x164   : > { %v517_v60 = vadd.f32 1e-05, %v513_v59 }
 0x165   : > { %v508_v61 = vpop.xlane.xlu1 %507  ;;  %v510_v62 = vpop.xlane.xlu0 %509 }
 0x166   : > { %1326 = vrsqrt.f32 %v517_v60  ;;  %v514_v63 = vmul.f32 0.03125, %v508_v61  ;;  %v515_v0 = vmul.f32 0.03125, %v510_v62  ;;  %v1082_v62 = vld [vmem:[%s458_s15] ss:$0 sm:$0xff] }
 0x168   : > { %v518_v1 = vadd.f32 1e-05, %v514_v63  ;;  %v519_v2 = vadd.f32 1e-05, %v515_v0 }
 0x169   : > { %v580_v3 = vpop.permute.xlu1 %579 }
 0x16a   : > { %1328 = vrsqrt.f32 %v518_v1 }
 0x16b   : > { %1330 = vrsqrt.f32 %v519_v2 }
 0x16d   : > { %v585_v8 = vpop.permute.xlu1 %584  ;;  %v575_v22 = vpop.permute.xlu0 %574 }
 0x170   : > { %v1327_v9 = vpop.eup %1326 }
 0x171   : > { %v525_v11 = vmul.f32 %v1327_v9, %v1655_v34  ;;  %v616_v13 = vpop.permute.xlu1 %615 }
 0x173   : > { %v536_v14 = vmul.f32 %v1080_v10, %v525_v11 }
 0x174   : > { %v1329_v15 = vpop.eup %1328 }
 0x175   : > { %v1331_v16 = vpop.eup %1330  ;;  %v526_v17 = vmul.f32 %v1329_v15, %v1668_v39  ;;  %v547_v18 = vadd.f32 %v1081_v12, %v536_v14  ;;  %v590_v23 = vpop.permute.xlu1 %589 }
 0x176   : > { %v527_v19 = vmul.f32 %v1331_v16, %v1659_v35 }
 0x177   : > { %v537_v20 = vmul.f32 %v1080_v10, %v526_v17  ;;  %v556_v21 = vrot.slane %v547_v18, 7  ;;  %756 = vmatprep.mubr.f32.mxu0 %v547_v18  ;;  %v597_v31 = vrot.slane %v547_v18, 1 }
 0x178   : > { %v538_v34 = vmul.f32 %v1080_v10, %v527_v19 }
 0x179   : > { %v548_v24 = vadd.f32 %v1081_v12, %v537_v20  ;;  %v567_v26 = vsel %vm555_vm1, 0.0, %v556_v21  ;;  %v621_v37 = vpop.permute.xlu1 %620  ;;  %v878_v20 = vpop.permute.xlu0 %877 }
 0x17a   : > { %v549_v27 = vadd.f32 %v1081_v12, %v538_v34  ;;  %v592_v28 = vmul.f32 %v575_v22, %v567_v26 }
 0x17b   : > { %v557_v29 = vrot.slane %v548_v24, 7  ;;  %v598_v30 = vrot.slane %v548_v24, 1 }
 0x17c   : > { %v559_v39 = vrot.slane %v549_v27, 7  ;;  %v600_v32 = vrot.slane %v549_v27, 1  ;;  %757 = vmatmul.mubr.f32.vlgmr.msra.gmra.mrb[0].mxu0 %v592_v28 }
 0x17d   : > { %v558_v35 = vsel %vm555_vm1, %v556_v21, %v557_v29  ;;  %761 = vmatprep.mubr.f32.mxu0 %v548_v24  ;;  %v599_v33 = vsel %vm596_vm2, %v597_v31, %v598_v30  ;;  %v626_v44 = vpop.permute.xlu1 %625 }
 0x17e   : > { %v593_v36 = vmul.f32 %v580_v3, %v558_v35  ;;  %v601_v38 = vsel %vm596_vm2, %v598_v30, %v600_v32  ;;  %v633_v40 = vmul.f32 %v616_v13, %v599_v33  ;;  %v560_v41 = vsel %vm555_vm1, %v557_v29, %v559_v39 }
 0x17f   : > { %v634_v42 = vmul.f32 %v621_v37, %v601_v38  ;;  %v594_v43 = vmul.f32 %v585_v8, %v560_v41  ;;  %v888_v37 = vpop.permute.xlu0 %887 }
 0x180   : > { %762 = vmatmul.mubr.f32.gmra.mrb[2].mxu0 %v593_v36  ;;  %1184 = vmatprep.mubr.f32.mxu1 %v633_v40 }
 0x181   : > { %766 = vmatprep.mubr.f32.mxu0 %v549_v27  ;;  %1185 = vmatmul.mubr.f32.vlgmr.msra.gmra.mrb[0].mxu1 %v634_v42 }
 0x184   : > { %767 = vmatmul.mubr.f32.gmra.mrb[4].mxu0 %v594_v43 }
 0x1ae   : > { %v512_v45 = vpop.xlane.xlu1 %511 }
 0x1af   : > { %v516_v46 = vmul.f32 0.03125, %v512_v45 }
 0x1b1   : > { %v520_v47 = vadd.f32 1e-05, %v516_v46 }
 0x1b2   : > { %v631_v56 = vpop.permute.xlu1 %630 }
 0x1b3   : > { %1332 = vrsqrt.f32 %v520_v47 }
 0x1b6   : > { %v873_v15 = vpop.permute.xlu1 %872 }
 0x1bd   : > { %v1333_v48 = vpop.eup %1332 }
 0x1be   : > { %v528_v49 = vmul.f32 %v1333_v48, %v1740_v54 }
 0x1c0   : > { %v539_v50 = vmul.f32 %v1080_v10, %v528_v49 }
 0x1c2   : > { %v550_v51 = vadd.f32 %v1081_v12, %v539_v50 }
 0x1c4   : > { %v602_v52 = vrot.slane %v550_v51, 1  ;;  %771 = vmatprep.mubr.f32.mxu0 %v550_v51  ;;  %v561_v53 = vrot.slane %v550_v51, 7 }
 0x1c6   : > { %v608_v55 = vsel %vm596_vm2, %v602_v52, 0.0  ;;  %v562_v57 = vsel %vm555_vm1, %v559_v39, %v561_v53  ;;  %v603_v25 = vsel %vm596_vm2, %v600_v32, %v602_v52  ;;  %v883_v32 = vpop.permute.xlu1 %882 }
 0x1c7   : > { %v636_v58 = vmul.f32 %v631_v56, %v608_v55  ;;  %v595_v59 = vmul.f32 %v590_v23, %v562_v57  ;;  %v635_v60 = vmul.f32 %v626_v44, %v603_v25 }
 0x1c9   : > { %772 = vmatmul.mubr.f32.gmra.mrb[6].mxu0 %v595_v59  ;;  %1187 = vmatprep.mubr.f32.mxu1 %v635_v60 }
 0x1ca   : > { %1188 = vmatmul.mubr.f32.gmra.mrb[2].mxu1 %v636_v58 }
 0x24f   : > { %v1120_v54 = vpop.f32.mrb[0].mxu0 }
 0x250   : > { %v1121_v61 = vpop.f32.mrb[1].mxu0 }
 0x251   : > { %v1122_v63 = vadd.f32 %v1121_v61, %v1120_v54 }
 0x253   : > { %v1123_v0 = vpop.f32.mrb[2].mxu0  ;;  %v759_v1 = vadd.f32 %v1122_v63, %v1082_v62 }
 0x254   : > { %v1124_v2 = vpop.f32.mrb[3].mxu0  ;;  %v1186_v3 = vpop.f32.mrb[0].mxu1 }
 0x255   : > { %v1125_v8 = vadd.f32 %v1124_v2, %v1123_v0  ;;  %v843_v9 = vpop.f32.mrb[1].mxu1 }
 0x256   : > { %v844_v10 = vadd.f32 %v843_v9, %v759_v1 }
 0x257   : > { %v764_v11 = vadd.f32 %v1125_v8, %v1082_v62  ;;  %v1126_v12 = vpop.f32.mrb[4].mxu0 }
 0x258   : > { %v862_v13 = vmax.f32 %v844_v10, 0.0  ;;  %v1127_v14 = vpop.f32.mrb[5].mxu0 }
 0x259   : > { %v849_v16 = vadd.f32 %v1186_v3, %v764_v11  ;;  %v1128_v17 = vadd.f32 %v1127_v14, %v1126_v12 }
 0x25a   : > { %v890_v18 = vmul.f32 %v873_v15, %v862_v13 }
 0x25b   : > { %v863_v19 = vmax.f32 %v849_v16, 0.0  ;;  %v769_v27 = vadd.f32 %v1128_v17, %v1082_v62 }
 0x25c   : > { %v894_v21 = vadd.f32 %v890_v18, %v1626_v4 }
 0x25d   : > { %v891_v22 = vmul.f32 %v878_v20, %v863_v19 }
 0x25e   : > { %898 = vst [vmem:[#allocation2] sm:$0xff] %v894_v21  ;;  %906 = vst [vmem:[#allocation6] sm:$0xff] (!%p1083_p9), %v894_v21 }
 0x25f   : > { %v895_v34 = vadd.f32 %v891_v22, %v1632_v6 }
 0x261   : > { %899 = vst [vmem:[#allocation2 + $0x8] sm:$0xff] %v895_v34  ;;  %907 = vst [vmem:[#allocation6 + $0x8] sm:$0xff] (!%p1083_p9), %v895_v34 }
 0x29c   : > { %v1129_v23 = vpop.f32.mrb[6].mxu0 }
 0x29d   : > { %v1130_v24 = vpop.f32.mrb[7].mxu0  ;;  %v1189_v26 = vpop.f32.mrb[2].mxu1 }
 0x29e   : > { %v1131_v28 = vadd.f32 %v1130_v24, %v1129_v23  ;;  %v853_v29 = vpop.f32.mrb[3].mxu1 }
 0x29f   : > { %v854_v30 = vadd.f32 %v853_v29, %v769_v27 }
 0x2a0   : > { %v774_v31 = vadd.f32 %v1131_v28, %v1082_v62 }
 0x2a1   : > { %v864_v39 = vmax.f32 %v854_v30, 0.0 }
 0x2a2   : > { %v859_v35 = vadd.f32 %v1189_v26, %v774_v31 }
 0x2a3   : > { %v892_v33 = vmul.f32 %v883_v32, %v864_v39 }
 0x2a4   : > { %v865_v36 = vmax.f32 %v859_v35, 0.0  ;;  %905 = sbr.rel (%p1083_p9) target bundleno = 683 (0x2ab), region = 64 }
 0x2a5   : > { %v896_v4 = vadd.f32 %v892_v33, %v1628_v5 }
 0x2a6   : > { %v893_v38 = vmul.f32 %v888_v37, %v865_v36 }
 0x2a7   : > { %900 = vst [vmem:[#allocation2 + $0x10] sm:$0xff] %v896_v4  ;;  %908 = vst [vmem:[#allocation6 + $0x10] sm:$0xff] (!%p1083_p9), %v896_v4 }
 0x2a8   : > { %v897_v6 = vadd.f32 %v893_v38, %v1634_v7 }
 0x2aa   : > { %901 = vst [vmem:[#allocation2 + $0x18] sm:$0xff] %v897_v6  ;;  %909 = vst [vmem:[#allocation6 + $0x18] sm:$0xff] (!%p1083_p9), %v897_v6 }
 0x2ab PF: > { %s1843_s22 = sadd.s32 4294967295, %s1444_s10   ;;  %s1450_s25 = smov [#allocation6]  }
 0x2ac   : > { %p1787_p5 = scmp.eq.s32.totalorder %s1843_s22, 2  ;;  %s919_s19 = sshll.u32 %s1450_s25, 4  ;;  %s920_s19 = int_to_ptr.vmem [resolvable:$true] %s919_s19 }
 0x2ad   : > { %s1364_s24 = scalar_lea.vmem %s920_s19, 512  ;;  %p1371_p12 = scmp.lt.s32.totalorder %s920_s19, %s920_s19 }
 0x2ae   : > { %p1365_p6 = scmp.ne.s32.totalorder %s920_s19, %s1364_s24  ;;  %p1372_p0 = scmp.lt.s32.totalorder %s1364_s24, %s1364_s24 }
 0x2b0   : > { %p1366_p8 = pnand %p1365_p6, %p1787_p5  ;;  %p1373_p1 = por %p1372_p0, %p1371_p12 }
 0x2b2   : > { %p1367_p10 = pneg %p1366_p8 }
 0x2b4   : > { %p1374_p2 = pnand %p1373_p1, %p1367_p10 }
 0x2b6   : > { %1377 = shalt.err (!%p1374_p2)
}
 0x2b7   : > { %s1378_s11 = scalar_lea.hbm %s1839_s8, 512 }
 0x2b8   : > { %p1379_p11 = scmp.ne.s32.totalorder %s1839_s8, %s1378_s11  ;;  %p1384_p4 = scmp.lt.u32.totalorder %s1378_s11, %s1839_s8 }
 0x2ba   : > { %p1380_p13 = pnand %p1379_p11, %p1787_p5 }
 0x2bc   : > { %p1381_p3 = pneg %p1380_p13 }
 0x2be   : > { %p1386_p7 = pnand %p1384_p4, %p1381_p3 }
 0x2c0   : > { %1389 = shalt.err (!%p1386_p7)
}
 0x2c1   : > { %s1451_s21 = smov 128   ;;  %s1452_s23 = smov 8  }
 0x2c2   : > { %1260 = dma.vmem_to_hbm [thread:$0]  (%p1787_p5), %s920_s19, 512, %s1839_s8, [#allocation5], %s1451_s21, %s1451_s21, %s1452_s23  }
 0x2c3   : > { %1419 = dma.done.wait (%p1787_p5), [#allocation5], 512  }
 0x2c4   : > { %1421 = vsyncadd (%p1787_p5), [#allocation5], 4294966784 }
 0x2c5 PF: > { %s22_s10 = sadd.s32 1, %s1444_s10   ;;  %s1845_s27 = smov %s1428_s28 }
 0x2c6   : > { %p19_p9 = scmp.ge.s32.totalorder %s22_s10, 5   ;;  %s1846_s28 = smov %s1432_s29 }
 0x2c7   : > { %s1847_s29 = smov %s1545_s16  ;;  %s1848_s30 = smov %s1440_s9 }
 0x2c8   : > { %s1849_s9 = smov %s1851_s12  ;;  %21 = sbr.rel (!%p19_p9) target bundleno = 5 (0x5), region = 119 }
 0x2cf   :  { %935 = vsyncpa [#allocation4], 1 }
 0x2d0   :  { %937 = vsyncpa [#allocation4 + $0x1], 1 }
 0x2d1   :  { %938 = vsyncpa [#allocation5], 1 }
 0x2d2   :  { %940 = vsyncpa [#allocation5 + $0x1], 1 }

</bundles_post_ra>
